<compile_context>
chip_gen: v5e
topology: v5e:2x2
jax: 0.10.0
libtpu: 0.0.40
codegen_flags: <defaults>
</compile_context>

<pallas_src>
import jax
import jax.numpy as jnp
from jax.experimental import pallas as pl
from jax.experimental.pallas import tpu as pltpu


def _ffn_kernel(x_ref, w1_ref, b1_ref, w2_ref, b2_ref, o_ref, acc_ref):
    # x_ref : (tm, E)     token tile (constant across the F axis)
    # w1_ref: (E, tf)     first-layer weight tile
    # b1_ref: (1, tf)
    # w2_ref: (tf, E)     second-layer weight tile
    # b2_ref: (1, E)
    # o_ref : (tm, E)     output tile (resident across the F axis)
    # acc_ref: (tm, E) f32 VMEM accumulator
    f = pl.program_id(1)

    @pl.when(f == 0)
    def _():
        # Fuse the second bias into the accumulator init (added exactly once).
        acc_ref[...] = jnp.broadcast_to(
            b2_ref[...].astype(jnp.float32), acc_ref.shape)

    # relu(x @ W1_tile + b1_tile) — f32 accumulation on the MXU.
    h = jnp.dot(x_ref[...], w1_ref[...], preferred_element_type=jnp.float32)
    h = jnp.maximum(h + b1_ref[...].astype(jnp.float32), 0.0)
    # Dropout(p=0) is the identity -> nothing to do.
    acc_ref[...] += jnp.dot(h.astype(w2_ref.dtype), w2_ref[...],
                            preferred_element_type=jnp.float32)

    @pl.when(f == pl.num_programs(1) - 1)
    def _():
        o_ref[...] = acc_ref[...].astype(o_ref.dtype)


def _round_up(x, n):
    return ((x + n - 1) // n) * n


def positionwise_ffn(x, w1, b1, w2, b2, *, tm=256, tf=512,
                     compute_dtype=None, vmem_limit_bytes=48 * 1024 * 1024):
    """x: (batch, seq, embed_dim) -> (batch, seq, embed_dim).

    w1: (embed_dim, posff_dim), w2: (posff_dim, embed_dim)  [i.e. torch W.T],
    b1: (posff_dim,), b2: (embed_dim,).
    compute_dtype: dtype used for the MXU operands (e.g. jnp.bfloat16);
    accumulation is always f32, output keeps x.dtype.
    """
    batch, seq, embed_dim = x.shape
    posff_dim = w1.shape[1]
    out_dtype = x.dtype
    if compute_dtype is None:
        compute_dtype = x.dtype

    m = batch * seq

    # Clamp tiles at small problem sizes; keep (8, 128)-friendly alignment.
    tm = max(8, min(tm, _round_up(m, 8)))
    tf = max(128, min(tf, _round_up(posff_dim, 128)))

    m_pad = _round_up(m, tm)
    f_pad = _round_up(posff_dim, tf)

    x2d = x.reshape(m, embed_dim).astype(compute_dtype)
    if m_pad != m:
        x2d = jnp.pad(x2d, ((0, m_pad - m), (0, 0)))

    w1c = w1.astype(compute_dtype)
    w2c = w2.astype(compute_dtype)
    b1_2d = b1.reshape(1, posff_dim).astype(jnp.float32)
    b2_2d = b2.reshape(1, embed_dim).astype(jnp.float32)
    if f_pad != posff_dim:
        # Zero-padded hidden units contribute 0 (zero rows of W2), so this is exact.
        w1c = jnp.pad(w1c, ((0, 0), (0, f_pad - posff_dim)))
        w2c = jnp.pad(w2c, ((0, f_pad - posff_dim), (0, 0)))
        b1_2d = jnp.pad(b1_2d, ((0, 0), (0, f_pad - posff_dim)))

    grid = (m_pad // tm, f_pad // tf)

    itemsize = jnp.dtype(compute_dtype).itemsize
    cost = pl.CostEstimate(
        flops=4 * m_pad * embed_dim * f_pad,  # two matmuls
        transcendentals=0,
        bytes_accessed=(m_pad * embed_dim * itemsize            # x
                        + embed_dim * f_pad * itemsize          # W1
                        + f_pad * embed_dim * itemsize          # W2
                        + (f_pad + embed_dim) * 4               # biases
                        + m_pad * embed_dim * jnp.dtype(out_dtype).itemsize))

    out2d = pl.pallas_call(
        _ffn_kernel,
        out_shape=jax.ShapeDtypeStruct((m_pad, embed_dim), out_dtype),
        grid_spec=pltpu.PrefetchScalarGridSpec(
            num_scalar_prefetch=0,
            grid=grid,                                      # (M parallel, F reduction)
            in_specs=[
                pl.BlockSpec((tm, embed_dim), lambda i, f: (i, 0)),   # x tile
                pl.BlockSpec((embed_dim, tf), lambda i, f: (0, f)),   # W1 tile
                pl.BlockSpec((1, tf), lambda i, f: (0, f)),           # b1 tile
                pl.BlockSpec((tf, embed_dim), lambda i, f: (f, 0)),   # W2 tile
                pl.BlockSpec((1, embed_dim), lambda i, f: (0, 0)),    # b2
            ],
            out_specs=pl.BlockSpec((tm, embed_dim), lambda i, f: (i, 0)),
            scratch_shapes=[pltpu.VMEM((tm, embed_dim), jnp.float32)],
        ),
        compiler_params=pltpu.CompilerParams(
            dimension_semantics=("parallel", "arbitrary"),
            vmem_limit_bytes=vmem_limit_bytes),
        cost_estimate=cost,
    )(x2d, w1c, b1_2d, w2c, b2_2d)

    return out2d[:m].reshape(batch, seq, embed_dim)


def _reference(x, w1, b1, w2, b2):
    h = jnp.maximum(jnp.einsum("bse,ef->bsf", x, w1) + b1, 0.0)
    return jnp.einsum("bsf,fe->bse", h, w2) + b2


if __name__ == "__main__":
    # Small shapes consistent with the module's forward: x (batch, seq, embed_dim).
    batch, seq = 2, 8
    embed_dim, posff_dim = 128, 256

    key = jax.random.PRNGKey(0)
    kx, k1, kb1, k2, kb2 = jax.random.split(key, 5)

    x = jax.random.normal(kx, (batch, seq, embed_dim), dtype=jnp.float32)
    # torch Linear stores W as (out, in); we keep the transposed (in, out) layout
    # so the kernel computes x @ W + b directly.
    w1 = jax.random.normal(k1, (embed_dim, posff_dim), dtype=jnp.float32) * 0.02
    b1 = jax.random.normal(kb1, (posff_dim,), dtype=jnp.float32) * 0.02
    w2 = jax.random.normal(k2, (posff_dim, embed_dim), dtype=jnp.float32) * 0.02
    b2 = jax.random.normal(kb2, (embed_dim,), dtype=jnp.float32) * 0.02

    ref = _reference(x, w1, b1, w2, b2)

    # f32 operands: tight correctness check.
    out_f32 = jax.block_until_ready(positionwise_ffn(x, w1, b1, w2, b2))
    assert out_f32.shape == (batch, seq, embed_dim)
    assert jnp.allclose(out_f32, ref, atol=1e-4, rtol=1e-4)

    # bf16 operands (the recommended fast path): f32 accumulation, looser check.
    out_bf16 = jax.block_until_ready(
        positionwise_ffn(x, w1, b1, w2, b2, compute_dtype=jnp.bfloat16))
    assert out_bf16.shape == (batch, seq, embed_dim)
    assert jnp.allclose(out_bf16.astype(jnp.float32), ref, atol=3e-2, rtol=3e-2)

    print("KERNEL_OK")
</pallas_src>

<mosaic_0001>
module attributes {stable_mosaic.version = 11 : i64} {
  func.func @_ffn_kernel(%arg0: i32, %arg1: i32, %arg2: memref<16x128xf32, #tpu.memory_space<vmem>>, %arg3: memref<128x256xf32, #tpu.memory_space<vmem>>, %arg4: memref<1x256xf32, #tpu.memory_space<vmem>>, %arg5: memref<256x128xf32, #tpu.memory_space<vmem>>, %arg6: memref<1x128xf32, #tpu.memory_space<vmem>>, %arg7: memref<16x128xf32, #tpu.memory_space<vmem>>, %arg8: memref<16x128xf32, #tpu.memory_space<vmem>>) attributes {dimension_semantics = [#tpu.dimension_semantics<parallel>, #tpu.dimension_semantics<arbitrary>], iteration_bounds = array<i64: 1, 1>, scalar_prefetch = 0 : i64, scratch_operands = 1 : i64, tpu.core_type = #tpu.core_type<tc>, window_params = [{transform_indices = @transform_0, window_bounds = array<i64: 16, 128>}, {transform_indices = @transform_1, window_bounds = array<i64: 128, 256>}, {transform_indices = @transform_2, window_bounds = array<i64: 1, 256>}, {transform_indices = @transform_3, window_bounds = array<i64: 256, 128>}, {pipeline_mode = #tpu.pipeline_mode<synchronous>, transform_indices = @transform_4, window_bounds = array<i64: 1, 128>}, {transform_indices = @transform_5, window_bounds = array<i64: 16, 128>}]} {
    %c0_i32 = arith.constant 0 : i32
    %0 = arith.cmpi eq, %arg1, %c0_i32 : i32
    %1 = arith.extui %0 : i1 to i32
    %c0_i32_0 = arith.constant 0 : i32
    %2 = arith.cmpi ne, %1, %c0_i32_0 : i32
    scf.if %2 {
      %c0_16 = arith.constant 0 : index
      %c0_17 = arith.constant 0 : index
      %19 = vector.load %arg6[%c0_16, %c0_17] : memref<1x128xf32, #tpu.memory_space<vmem>>, vector<1x128xf32>
      %20 = vector.shape_cast %19 : vector<1x128xf32> to vector<1x128xf32>
      %21 = vector.broadcast %20 : vector<1x128xf32> to vector<16x128xf32>
      %c0_18 = arith.constant 0 : index
      %c0_19 = arith.constant 0 : index
      %22 = vector.load %arg8[%c0_18, %c0_19] : memref<16x128xf32, #tpu.memory_space<vmem>>, vector<16x128xf32>
      tpu.vector_store %arg8[%c0_18, %c0_19], %21 {strides = array<i32>} : memref<16x128xf32, #tpu.memory_space<vmem>>, vector<16x128xf32>,
    } else {
    }
    %c0 = arith.constant 0 : index
    %c0_1 = arith.constant 0 : index
    %3 = vector.load %arg2[%c0, %c0_1] : memref<16x128xf32, #tpu.memory_space<vmem>>, vector<16x128xf32>
    %c0_2 = arith.constant 0 : index
    %c0_3 = arith.constant 0 : index
    %4 = vector.load %arg3[%c0_2, %c0_3] : memref<128x256xf32, #tpu.memory_space<vmem>>, vector<128x256xf32>
    %cst = arith.constant dense<0.000000e+00> : vector<16x256xf32>
    %5 = tpu.matmul %3, %4, %cst {dimension_numbers = #tpu.dot_dimension_numbers<[1], [0], [0], [1], [0, 0, 1, 1], [], []>} : vector<16x128xf32>, vector<128x256xf32>, vector<16x256xf32> -> vector<16x256xf32>
    %c0_4 = arith.constant 0 : index
    %c0_5 = arith.constant 0 : index
    %6 = vector.load %arg4[%c0_4, %c0_5] : memref<1x256xf32, #tpu.memory_space<vmem>>, vector<1x256xf32>
    %7 = vector.broadcast %6 : vector<1x256xf32> to vector<16x256xf32>
    %8 = arith.addf %5, %7 : vector<16x256xf32>
    %cst_6 = arith.constant 0.000000e+00 : f32
    %9 = vector.broadcast %cst_6 : f32 to vector<16x256xf32>
    %10 = arith.maximumf %8, %9 : vector<16x256xf32>
    %c0_7 = arith.constant 0 : index
    %c0_8 = arith.constant 0 : index
    %11 = vector.load %arg8[%c0_7, %c0_8] : memref<16x128xf32, #tpu.memory_space<vmem>>, vector<16x128xf32>
    %c0_9 = arith.constant 0 : index
    %c0_10 = arith.constant 0 : index
    %12 = vector.load %arg5[%c0_9, %c0_10] : memref<256x128xf32, #tpu.memory_space<vmem>>, vector<256x128xf32>
    %cst_11 = arith.constant dense<0.000000e+00> : vector<16x128xf32>
    %13 = tpu.matmul %10, %12, %cst_11 {dimension_numbers = #tpu.dot_dimension_numbers<[1], [0], [0], [1], [0, 0, 1, 1], [], []>} : vector<16x256xf32>, vector<256x128xf32>, vector<16x128xf32> -> vector<16x128xf32>
    %14 = arith.addf %11, %13 : vector<16x128xf32>
    %c0_12 = arith.constant 0 : index
    %c0_13 = arith.constant 0 : index
    %15 = vector.load %arg8[%c0_12, %c0_13] : memref<16x128xf32, #tpu.memory_space<vmem>>, vector<16x128xf32>
    tpu.vector_store %arg8[%c0_12, %c0_13], %14 {strides = array<i32>} : memref<16x128xf32, #tpu.memory_space<vmem>>, vector<16x128xf32>,
    %c0_i32_14 = arith.constant 0 : i32
    %16 = arith.cmpi eq, %arg1, %c0_i32_14 : i32
    %17 = arith.extui %16 : i1 to i32
    %c0_i32_15 = arith.constant 0 : i32
    %18 = arith.cmpi ne, %17, %c0_i32_15 : i32
    scf.if %18 {
      %c0_16 = arith.constant 0 : index
      %c0_17 = arith.constant 0 : index
      %19 = vector.load %arg8[%c0_16, %c0_17] : memref<16x128xf32, #tpu.memory_space<vmem>>, vector<16x128xf32>
      %c0_18 = arith.constant 0 : index
      %c0_19 = arith.constant 0 : index
      %20 = vector.load %arg7[%c0_18, %c0_19] : memref<16x128xf32, #tpu.memory_space<vmem>>, vector<16x128xf32>
      tpu.vector_store %arg7[%c0_18, %c0_19], %19 {strides = array<i32>} : memref<16x128xf32, #tpu.memory_space<vmem>>, vector<16x128xf32>,
    } else {
    }
    return
  }
  func.func @transform_0(%arg0: i32, %arg1: i32) -> (i32, i32) {
    %c0_i32 = arith.constant 0 : i32
    %c0_i32_0 = arith.constant 0 : i32
    return %arg0, %c0_i32 : i32, i32
  }
  func.func @transform_1(%arg0: i32, %arg1: i32) -> (i32, i32) {
    %c0_i32 = arith.constant 0 : i32
    %c0_i32_0 = arith.constant 0 : i32
    return %c0_i32, %arg1 : i32, i32
  }
  func.func @transform_2(%arg0: i32, %arg1: i32) -> (i32, i32) {
    %c0_i32 = arith.constant 0 : i32
    %c0_i32_0 = arith.constant 0 : i32
    return %c0_i32, %arg1 : i32, i32
  }
  func.func @transform_3(%arg0: i32, %arg1: i32) -> (i32, i32) {
    %c0_i32 = arith.constant 0 : i32
    %c0_i32_0 = arith.constant 0 : i32
    return %arg1, %c0_i32 : i32, i32
  }
  func.func @transform_4(%arg0: i32, %arg1: i32) -> (i32, i32) {
    %c0_i32 = arith.constant 0 : i32
    %c0_i32_0 = arith.constant 0 : i32
    %c0_i32_1 = arith.constant 0 : i32
    return %c0_i32, %c0_i32_0 : i32, i32
  }
  func.func @transform_5(%arg0: i32, %arg1: i32) -> (i32, i32) {
    %c0_i32 = arith.constant 0 : i32
    %c0_i32_0 = arith.constant 0 : i32
    return %arg0, %c0_i32 : i32, i32
  }
}

</mosaic_0001>

<bundles_post_ra>
// kernel: tpu_custom_call.1
= control target key start
LH: loop header
LB: loop body
LE: loop exit
PB: predicated region body
PF: predicated region fallthrough
CT: control target
= control target key end

     0   :  { %10 = vsyncpa [#allocation4], 0  ;;  %s498_s0 = inlined_call_operand.hbm [shape: f32[16,128], index: 0, kind: input, shape index: {}]   ;;  %s499_s1 = inlined_call_operand.hbm [shape: f32[128,256], index: 1, kind: input, shape index: {}]   ;;  %s500_s2 = inlined_call_operand.hbm [shape: f32[1,256], index: 2, kind: input, shape index: {}]   ;;  %s501_s3 = inlined_call_operand.hbm [shape: f32[256,128], index: 3, kind: input, shape index: {}]   ;;  %s502_s4 = inlined_call_operand.vmem [shape: f32[1,128], index: 4, kind: input, shape index: {}]   ;;  %s503_s5 = inlined_call_operand.hbm [shape: f32[16,128], index: 5, kind: output, shape index: {}]  }
   0x1   :  { %11 = vsyncpa [#allocation7], 0 }
   0x2   :  { %12 = vsyncpa [#allocation10], 0  ;;  %s31_s20 = sshll.u32 %s499_s1, 4  ;;  %s32_s20 = int_to_ptr.hbm [resolvable:$true] %s31_s20 }
   0x3   :  { %13 = vsyncpa [#allocation5], 0  ;;  %s432_s21 = smov [#allocation6]   ;;  %s18_s25 = sshll.u32 %s498_s0, 4  ;;  %s19_s25 = int_to_ptr.hbm [resolvable:$true] %s18_s25 }
   0x4   :  { %s33_s22 = sshll.u32 %s432_s21, 4  ;;  %s433_s26 = smov 256   ;;  %s34_s22 = int_to_ptr.vmem [resolvable:$true] %s33_s22 }
   0x5   :  { %s434_s27 = smov 16   ;;  %s435_s28 = smov [#allocation3]  }
   0x6   :  { %39 = dma.hbm_to_vmem [thread:$0]  %s32_s20, 4096, %s34_s22, [#allocation7], %s433_s26, %s433_s26, %s434_s27  }
   0x7   :  { %s20_s29 = sshll.u32 %s435_s28, 4  ;;  %s436_s30 = smov 128   ;;  %s21_s29 = int_to_ptr.vmem [resolvable:$true] %s20_s29 }
   0x8   :  { %s437_s6 = smov 8   ;;  %s45_s8 = sshll.u32 %s500_s2, 4  ;;  %s46_s8 = int_to_ptr.hbm [resolvable:$true] %s45_s8 }
   0x9   :  { %26 = dma.hbm_to_vmem [thread:$0]  %s19_s25, 256, %s21_s29, [#allocation4], %s436_s30, %s436_s30, %s437_s6  }
   0xa   :  { %s438_s9 = smov [#allocation8]   ;;  %s55_s12 = sshll.u32 %s501_s3, 4  ;;  %s56_s12 = int_to_ptr.hbm [resolvable:$true] %s55_s12 }
   0xb   :  { %s47_s0 = sshll.u32 %s438_s9, 4  ;;  %s439_s13 = smov [#allocation9]   ;;  %s48_s0 = int_to_ptr.vmem [resolvable:$true] %s47_s0 }
   0xc   :  { %50 = dma.hbm_to_vmem [thread:$0]  %s46_s8, 32, %s48_s0, [#allocation7]  }
   0xd   :  { %s57_s14 = sshll.u32 %s439_s13, 4  ;;  %s58_s14 = int_to_ptr.vmem [resolvable:$true] %s57_s14 }
   0xe   :  { %63 = dma.hbm_to_vmem [thread:$0]  %s56_s12, 4096, %s58_s14, [#allocation10], %s436_s30, %s436_s30, %s437_s6  }
   0xf   :  { %424 = dma.done.wait [#allocation4], 256  }
  0x10   :  { %425 = vsyncadd [#allocation4], 4294967040 }
  0x11   :  { %426 = dma.done.wait [#allocation7], 4128  }
  0x12   :  { %427 = vsyncadd [#allocation7], 4294963168 }
  0x13   :  { %428 = dma.done.wait [#allocation10], 4096  }
  0x14   :  { %429 = vsyncadd [#allocation10], 4294963200  ;;  %v124_v0 = vld [vmem:[#allocation6 + $0xf0] sm:$0xff]  ;;  %v125_v1 = vld [vmem:[#allocation6 + $0xf8] sm:$0xff]  ;;  %s440_s15 = smov [#allocation11]   ;;  %s279_s19 = sshll.u32 %s503_s5, 4  ;;  %s280_s19 = int_to_ptr.hbm [resolvable:$true] %s279_s19 }
  0x15   :  { %v122_v2 = vld [vmem:[#allocation6 + $0xe0] sm:$0xff]  ;;  %132 = vmatpush.msra.mxu0 %v124_v0  ;;  %155 = vmatpush.msra.mxu1 %v125_v1  ;;  %v123_v3 = vld [vmem:[#allocation6 + $0xe8] sm:$0xff]  ;;  %v120_v4 = vld [vmem:[#allocation6 + $0xd0] sm:$0xff]  ;;  %s277_s16 = sshll.u32 %s440_s15, 4  ;;  %s278_s16 = int_to_ptr.vmem [resolvable:$true] %s277_s16 }
  0x16   :  { %v121_v5 = vld [vmem:[#allocation6 + $0xd8] sm:$0xff]  ;;  %v118_v6 = vld [vmem:[#allocation6 + $0xc0] sm:$0xff]  ;;  %v119_v7 = vld [vmem:[#allocation6 + $0xc8] sm:$0xff] }
  0x17   :  { %133 = vmatpush.msra.mxu0 %v122_v2  ;;  %156 = vmatpush.msra.mxu1 %v123_v3  ;;  %v116_v8 = vld [vmem:[#allocation6 + $0xb0] sm:$0xff]  ;;  %v117_v9 = vld [vmem:[#allocation6 + $0xb8] sm:$0xff]  ;;  %v114_v10 = vld [vmem:[#allocation6 + $0xa0] sm:$0xff] }
  0x18   :  { %v115_v11 = vld [vmem:[#allocation6 + $0xa8] sm:$0xff]  ;;  %v112_v12 = vld [vmem:[#allocation6 + $0x90] sm:$0xff]  ;;  %v113_v13 = vld [vmem:[#allocation6 + $0x98] sm:$0xff] }
  0x19   :  { %134 = vmatpush.msra.mxu0 %v120_v4  ;;  %157 = vmatpush.msra.mxu1 %v121_v5  ;;  %v110_v14 = vld [vmem:[#allocation6 + $0x80] sm:$0xff]  ;;  %v111_v17 = vld [vmem:[#allocation6 + $0x88] sm:$0xff]  ;;  %v198_v18 = vld [vmem:[#allocation9 + $0x70] sm:$0xff] }
  0x1a   :  { %v199_v15 = vld [vmem:[#allocation9 + $0x78] sm:$0xff]  ;;  %v214_v19 = vld [vmem:[#allocation9 + $0xf0] sm:$0xff]  ;;  %v197_v20 = vld [vmem:[#allocation9 + $0x68] sm:$0xff] }
  0x1b   :  { %135 = vmatpush.msra.mxu0 %v118_v6  ;;  %158 = vmatpush.msra.mxu1 %v119_v7  ;;  %v215_v16 = vld [vmem:[#allocation9 + $0xf8] sm:$0xff]  ;;  %v213_v21 = vld [vmem:[#allocation9 + $0xe8] sm:$0xff]  ;;  %v196_v24 = vld [vmem:[#allocation9 + $0x60] sm:$0xff] }
  0x1c   :  { %216 = vmatpush.msra.mxu2 %v199_v15  ;;  %239 = vmatpush.msra.mxu3 %v215_v16  ;;  %v108_v22 = vld [vmem:[#allocation6 + $0x70] sm:$0xff]  ;;  %v109_v23 = vld [vmem:[#allocation6 + $0x78] sm:$0xff]  ;;  %v212_v25 = vld [vmem:[#allocation9 + $0xe0] sm:$0xff] }
  0x1d   :  { %136 = vmatpush.msra.mxu0 %v116_v8  ;;  %159 = vmatpush.msra.mxu1 %v117_v9  ;;  %v106_v26 = vld [vmem:[#allocation6 + $0x60] sm:$0xff]  ;;  %v107_v27 = vld [vmem:[#allocation6 + $0x68] sm:$0xff]  ;;  %v104_v30 = vld [vmem:[#allocation6 + $0x50] sm:$0xff] }
  0x1e   :  { %217 = vmatpush.msra.mxu2 %v198_v18  ;;  %240 = vmatpush.msra.mxu3 %v214_v19  ;;  %v195_v28 = vld [vmem:[#allocation9 + $0x58] sm:$0xff]  ;;  %v194_v32 = vld [vmem:[#allocation9 + $0x50] sm:$0xff]  ;;  %v103_v35 = vld [vmem:[#allocation6 + $0x48] sm:$0xff] }
  0x1f   :  { %137 = vmatpush.msra.mxu0 %v114_v10  ;;  %160 = vmatpush.msra.mxu1 %v115_v11  ;;  %v211_v29 = vld [vmem:[#allocation9 + $0xd8] sm:$0xff]  ;;  %v210_v33 = vld [vmem:[#allocation9 + $0xd0] sm:$0xff]  ;;  %v193_v36 = vld [vmem:[#allocation9 + $0x48] sm:$0xff] }
  0x20   :  { %218 = vmatpush.msra.mxu2 %v197_v20  ;;  %241 = vmatpush.msra.mxu3 %v213_v21  ;;  %v105_v31 = vld [vmem:[#allocation6 + $0x58] sm:$0xff]  ;;  %v102_v34 = vld [vmem:[#allocation6 + $0x40] sm:$0xff]  ;;  %v209_v37 = vld [vmem:[#allocation9 + $0xc8] sm:$0xff] }
  0x21   :  { %138 = vmatpush.msra.mxu0 %v112_v12  ;;  %161 = vmatpush.msra.mxu1 %v113_v13  ;;  %v100_v38 = vld [vmem:[#allocation6 + $0x30] sm:$0xff]  ;;  %v101_v39 = vld [vmem:[#allocation6 + $0x38] sm:$0xff]  ;;  %v192_v40 = vld [vmem:[#allocation9 + $0x40] sm:$0xff] }
  0x22   :  { %219 = vmatpush.msra.mxu2 %v196_v24  ;;  %242 = vmatpush.msra.mxu3 %v212_v25  ;;  %v208_v41 = vld [vmem:[#allocation9 + $0xc0] sm:$0xff]  ;;  %v191_v44 = vld [vmem:[#allocation9 + $0x38] sm:$0xff]  ;;  %v96_v46 = vld [vmem:[#allocation6 + $0x10] sm:$0xff] }
  0x23   :  { %139 = vmatpush.msra.mxu0 %v110_v14  ;;  %162 = vmatpush.msra.mxu1 %v111_v17  ;;  %v98_v42 = vld [vmem:[#allocation6 + $0x20] sm:$0xff]  ;;  %v99_v43 = vld [vmem:[#allocation6 + $0x28] sm:$0xff]  ;;  %v97_v47 = vld [vmem:[#allocation6 + $0x18] sm:$0xff] }
  0x24   :  { %220 = vmatpush.msra.mxu2 %v195_v28  ;;  %243 = vmatpush.msra.mxu3 %v211_v29  ;;  %v207_v45 = vld [vmem:[#allocation9 + $0xb8] sm:$0xff]  ;;  %v190_v48 = vld [vmem:[#allocation9 + $0x30] sm:$0xff]  ;;  %v95_v51 = vld [vmem:[#allocation6 + $0x8] sm:$0xff] }
  0x25   :  { %140 = vmatpush.msra.mxu0 %v108_v22  ;;  %163 = vmatpush.msra.mxu1 %v109_v23  ;;  %v206_v49 = vld [vmem:[#allocation9 + $0xb0] sm:$0xff]  ;;  %v94_v50 = vld [vmem:[#allocation6] sm:$0xff]  ;;  %v189_v53 = vld [vmem:[#allocation9 + $0x28] sm:$0xff] }
  0x26   :  { %221 = vmatpush.msra.mxu2 %v194_v32  ;;  %244 = vmatpush.msra.mxu3 %v210_v33  ;;  %v92_v52 = vld [vmem:[#allocation3] sm:$0xff]  ;;  %v188_v55 = vld [vmem:[#allocation9 + $0x20] sm:$0xff]  ;;  %v187_v57 = vld [vmem:[#allocation9 + $0x18] sm:$0xff] }
  0x27   :  { %141 = vmatpush.msra.mxu0 %v106_v26  ;;  %164 = vmatpush.msra.mxu1 %v107_v27  ;;  %v205_v54 = vld [vmem:[#allocation9 + $0xa8] sm:$0xff]  ;;  %v204_v56 = vld [vmem:[#allocation9 + $0xa0] sm:$0xff]  ;;  %v203_v58 = vld [vmem:[#allocation9 + $0x98] sm:$0xff] }
  0x28   :  { %222 = vmatpush.msra.mxu2 %v193_v36  ;;  %245 = vmatpush.msra.mxu3 %v209_v37  ;;  %v93_v59 = vld [vmem:[#allocation3 + $0x8] sm:$0xff]  ;;  %v185_v62 = vld [vmem:[#allocation9 + $0x8] sm:$0xff]  ;;  %v184_v0 = vld [vmem:[#allocation9] sm:$0xff] }
  0x29   :  { %142 = vmatpush.msra.mxu0 %v104_v30  ;;  %165 = vmatpush.msra.mxu1 %v105_v31  ;;  %v186_v60 = vld [vmem:[#allocation9 + $0x10] sm:$0xff]  ;;  %v201_v63 = vld [vmem:[#allocation9 + $0x88] sm:$0xff]  ;;  %v200_v1 = vld [vmem:[#allocation9 + $0x80] sm:$0xff] }
  0x2a   :  { %223 = vmatpush.msra.mxu2 %v192_v40  ;;  %246 = vmatpush.msra.mxu3 %v208_v41  ;;  %v202_v61 = vld [vmem:[#allocation9 + $0x90] sm:$0xff]  ;;  %v126_v2 = vld [vmem:[#allocation8] sm:$0x3]  ;;  %v303_v17 = vld [vmem:[%s502_s4] ss:$0 sm:$0xff] }
  0x2b   :  { %143 = vmatpush.msra.mxu0 %v102_v34  ;;  %166 = vmatpush.msra.mxu1 %v103_v35  ;;  %v128_v3 = vperm.slane %v126_v2, 0  ;;  %v129_v4 = vperm.slane %v126_v2, 1 }
  0x2c   :  { %224 = vmatpush.msra.mxu2 %v191_v44  ;;  %247 = vmatpush.msra.mxu3 %v207_v45 }
  0x2d   :  { %144 = vmatpush.msra.mxu0 %v100_v38  ;;  %167 = vmatpush.msra.mxu1 %v101_v39 }
  0x2e   :  { %225 = vmatpush.msra.mxu2 %v190_v48  ;;  %248 = vmatpush.msra.mxu3 %v206_v49 }
  0x2f   :  { %145 = vmatpush.msra.mxu0 %v98_v42  ;;  %168 = vmatpush.msra.mxu1 %v99_v43 }
  0x30   :  { %226 = vmatpush.msra.mxu2 %v189_v53  ;;  %249 = vmatpush.msra.mxu3 %v205_v54 }
  0x31   :  { %146 = vmatpush.msra.mxu0 %v96_v46  ;;  %169 = vmatpush.msra.mxu1 %v97_v47 }
  0x32   :  { %227 = vmatpush.msra.mxu2 %v188_v55  ;;  %250 = vmatpush.msra.mxu3 %v204_v56 }
  0x33   :  { %147 = vmatpush.msra.mxu0 %v94_v50  ;;  %170 = vmatpush.msra.mxu1 %v95_v51 }
  0x34   :  { %148 = vmatmul.f32.vlgmr.msra.gmra.mxu0 %v92_v52  ;;  %171 = vmatmul.f32.vlgmr.msra.gmra.mxu1 %v92_v52 }
  0x35   :  { %228 = vmatpush.msra.mxu2 %v187_v57  ;;  %251 = vmatpush.msra.mxu3 %v203_v58 }
  0x37   :  { %229 = vmatpush.msra.mxu2 %v186_v60  ;;  %252 = vmatpush.msra.mxu3 %v202_v61 }
  0x39   :  { %230 = vmatpush.msra.mxu2 %v185_v62  ;;  %253 = vmatpush.msra.mxu3 %v201_v63 }
  0x3b   :  { %231 = vmatpush.msra.mxu2 %v184_v0  ;;  %254 = vmatpush.msra.mxu3 %v200_v1 }
  0x3c   :  { %151 = vmatmul.f32.gmra.mxu0 %v93_v59  ;;  %174 = vmatmul.f32.gmra.mxu1 %v93_v59 }
  0xb1   :  { %v149_v5 = vpop.f32.mrf.mxu0  ;;  %v172_v6 = vpop.f32.mrf.mxu1 }
  0xb2   :  { %v150_v7 = vadd.f32 %v149_v5, %v128_v3  ;;  %v173_v8 = vadd.f32 %v172_v6, %v129_v4 }
  0xb4   :  { %v178_v9 = vmax.f32 %v150_v7, 0.0  ;;  %v179_v10 = vmax.f32 %v173_v8, 0.0 }
  0xb6   :  { %232 = vmatmul.f32.vlgmr.msra.gmra.mxu2 %v178_v9  ;;  %255 = vmatmul.f32.vlgmr.msra.gmra.mxu3 %v179_v10 }
  0xb9   :  { %v152_v11 = vpop.f32.mrf.mxu0  ;;  %v175_v12 = vpop.f32.mrf.mxu1 }
  0xba   :  { %v153_v13 = vadd.f32 %v152_v11, %v128_v3  ;;  %v176_v14 = vadd.f32 %v175_v12, %v129_v4 }
  0xbc   :  { %v180_v15 = vmax.f32 %v153_v13, 0.0  ;;  %v181_v16 = vmax.f32 %v176_v14, 0.0 }
  0xbe   :  { %235 = vmatmul.f32.gmra.mxu2 %v180_v15  ;;  %258 = vmatmul.f32.gmra.mxu3 %v181_v16 }
 0x139   :  { %v233_v18 = vpop.f32.mrf.mxu2  ;;  %v256_v19 = vpop.f32.mrf.mxu3 }
 0x13a   :  { %v257_v20 = vadd.f32 %v256_v19, %v233_v18 }
 0x13c   :  { %v262_v21 = vadd.f32 %v303_v17, %v257_v20 }
 0x13e   :  { %271 = vst [vmem:[#allocation11] sm:$0xff] %v262_v21 }
 0x141   :  { %v236_v22 = vpop.f32.mrf.mxu2  ;;  %v259_v23 = vpop.f32.mrf.mxu3 }
 0x142   :  { %v260_v24 = vadd.f32 %v259_v23, %v236_v22 }
 0x144   :  { %v263_v25 = vadd.f32 %v303_v17, %v260_v24 }
 0x146   :  { %272 = vst [vmem:[#allocation11 + $0x8] sm:$0xff] %v263_v25 }
 0x147   :  { %285 = dma.vmem_to_hbm [thread:$0]  %s278_s16, 256, %s280_s19, [#allocation5], %s436_s30, %s436_s30, %s437_s6  }
 0x148   :  { %430 = dma.done.wait [#allocation5], 256  }
 0x149   :  { %431 = vsyncadd [#allocation5], 4294967040 }
 0x14a   :  { %290 = vsyncpa [#allocation4], 1 }
 0x14b   :  { %291 = vsyncpa [#allocation7], 1 }
 0x14c   :  { %292 = vsyncpa [#allocation10], 1 }
 0x14d   :  { %293 = vsyncpa [#allocation5], 1 }

</bundles_post_ra>
